<compile_context>
chip_gen: v7x
topology: tpu7x:2x2x1
jax: 0.10.0
libtpu: 0.0.40
codegen_flags: <defaults>
</compile_context>

<pallas_src>
import math

import jax
import jax.numpy as jnp
from jax.experimental import pallas as pl
from jax.experimental.pallas import tpu as pltpu

# ----------------------------- config ---------------------------------------
NUM_LAYERS = 2
HIDDEN = 32
NUM_HEADS = 4
HEAD_DIM = HIDDEN // NUM_HEADS
INTERMEDIATE = 64
LN_EPS = 1e-12
BATCH = 2
SEQ = 8
MASK_NEG = -1e9

VEC_ROWS = 8               # packed small-vector slab rows per layer
VEC_WIDTH = 3 * HIDDEN     # slab width (>= INTERMEDIATE and >= HIDDEN)
assert HIDDEN % NUM_HEADS == 0
assert VEC_WIDTH >= INTERMEDIATE and VEC_WIDTH >= HIDDEN


# ----------------------------- shared math ----------------------------------
def _layer_norm(x, gamma, beta, eps):
    mean = jnp.mean(x, axis=-1, keepdims=True)
    var = jnp.mean(jnp.square(x - mean), axis=-1, keepdims=True)
    return (x - mean) * jax.lax.rsqrt(var + eps) * gamma + beta


def _gelu(x):
    # TODO(synk): HF 'gelu' is the exact erf-based GELU; the tanh approximation
    # is used for robust Mosaic lowering (the in-script reference matches it).
    c = math.sqrt(2.0 / math.pi)
    return 0.5 * x * (1.0 + jnp.tanh(c * (x + 0.044715 * x * x * x)))


# ----------------------------- Pallas kernel --------------------------------
def make_encoder_kernel(num_heads, head_dim, hidden, intermediate, eps):
    def kernel(x_ref, mask_ref, wqkv_ref, wo_ref, wi_ref, w2_ref, vecs_ref,
               out_ref):
        layer = pl.program_id(1)

        # Layer 0: load this batch's hidden states into the (resident) output
        # block, which then carries the hidden state across the layer axis.
        @pl.when(layer == 0)
        def _():
            out_ref[...] = x_ref[...]

        h = out_ref[...]                      # (S, H) running hidden state
        bias = mask_ref[...]                  # (1, S) additive key mask

        w_qkv = wqkv_ref[...]                 # (H, 3H), q-scale folded in
        wo = wo_ref[...]                      # (H, H)
        wi = wi_ref[...]                      # (H, I)
        w2 = w2_ref[...]                      # (I, H)
        vecs = vecs_ref[...]                  # (VEC_ROWS, VEC_WIDTH)

        b_qkv = vecs[0:1, :]                  # (1, 3H)   q|k|v bias (q scaled)
        bi = vecs[1:2, :intermediate]         # (1, I)
        bo = vecs[2:3, :hidden]               # (1, H)
        g1 = vecs[3:4, :hidden]
        be1 = vecs[4:5, :hidden]
        b2 = vecs[5:6, :hidden]
        g2 = vecs[6:7, :hidden]
        be2 = vecs[7:8, :hidden]

        # ---- self-attention ----
        # Single lane-dense projection for Q, K and V of every head.
        qkv = jnp.dot(h, w_qkv, preferred_element_type=jnp.float32) + b_qkv

        ctx_heads = []
        for n in range(num_heads):            # unrolled at trace time
            lo = n * head_dim
            q_h = qkv[:, lo:lo + head_dim]                               # (S, hd)
            k_h = qkv[:, hidden + lo:hidden + lo + head_dim]             # (S, hd)
            v_h = qkv[:, 2 * hidden + lo:2 * hidden + lo + head_dim]     # (S, hd)
            # 1/sqrt(head_dim) already folded into the query weights/bias.
            s = jnp.einsum('qd,kd->qk', q_h, k_h,
                           preferred_element_type=jnp.float32) + bias    # (S, S)
            s = s - jnp.max(s, axis=-1, keepdims=True)
            p = jnp.exp(s)
            p = p * pl.reciprocal(jnp.sum(p, axis=-1, keepdims=True),
                                  approx=True)
            ctx_heads.append(jnp.dot(p, v_h,
                                     preferred_element_type=jnp.float32))
        ctx = jnp.concatenate(ctx_heads, axis=-1)                        # (S, H)

        # Single lane-dense output projection over the full hidden width.
        attn = jnp.dot(ctx, wo, preferred_element_type=jnp.float32) + bo
        h1 = _layer_norm(attn + h, g1, be1, eps)

        # ---- feed-forward ----
        inter = _gelu(jnp.dot(h1, wi, preferred_element_type=jnp.float32) + bi)
        ffn = jnp.dot(inter, w2, preferred_element_type=jnp.float32) + b2
        out_ref[...] = _layer_norm(ffn + h1, g2, be2, eps)

    return kernel


# ----------------------------- host-side packing -----------------------------
def pack_encoder_params(layer_params):
    """Stack per-layer weights with a leading layer axis, lane-dense layout."""
    scale = 1.0 / math.sqrt(HEAD_DIM)

    def pad_row(v):                      # (1, n) -> (1, VEC_WIDTH)
        return jnp.pad(v, ((0, 0), (0, VEC_WIDTH - v.shape[1])))

    wqkv, wo, wi, w2, vecs = [], [], [], [], []
    for p in layer_params:
        wqkv.append(jnp.concatenate([p["wq"] * scale, p["wk"], p["wv"]], axis=1))
        wo.append(p["wo"])
        wi.append(p["wi"])
        w2.append(p["w2"])
        b_qkv = jnp.concatenate([p["bq"] * scale, p["bk"], p["bv"]], axis=1)
        rows = [b_qkv, pad_row(p["bi"]), pad_row(p["bo"]), pad_row(p["g1"]),
                pad_row(p["be1"]), pad_row(p["b2"]), pad_row(p["g2"]),
                pad_row(p["be2"])]
        vecs.append(jnp.concatenate(rows, axis=0))        # (VEC_ROWS, VEC_WIDTH)

    return dict(wqkv=jnp.stack(wqkv),   # (L, H, 3H)
                wo=jnp.stack(wo),       # (L, H, H)
                wi=jnp.stack(wi),       # (L, H, I)
                w2=jnp.stack(w2),       # (L, I, H)
                vecs=jnp.stack(vecs))   # (L, VEC_ROWS, VEC_WIDTH)


def bert_encoder_pallas(hidden_states, attention_mask, layer_params):
    """Fused BertEncoder forward. hidden_states: (B,S,H); mask: (B,1,S) additive."""
    B, S, H = hidden_states.shape
    packed = pack_encoder_params(layer_params)
    L = packed["wqkv"].shape[0]
    I = packed["wi"].shape[2]

    kernel = make_encoder_kernel(NUM_HEADS, HEAD_DIM, H, I, LN_EPS)

    # Squeezed leading dim (batch or layer), selected per grid step.
    sq = pl.Squeezed() if hasattr(pl, "Squeezed") else None
    batch_map = lambda b, l: (b, 0, 0)
    layer_map = lambda b, l: (l, 0, 0)

    out = pl.pallas_call(
        kernel,
        out_shape=jax.ShapeDtypeStruct((B, S, H), jnp.float32),
        grid=(B, L),                                       # batch || , layers seq
        in_specs=[
            pl.BlockSpec((sq, S, H), batch_map),           # input hidden states
            pl.BlockSpec((sq, 1, S), batch_map),           # additive key mask
            pl.BlockSpec((sq, H, 3 * H), layer_map),       # fused q|k|v weights
            pl.BlockSpec((sq, H, H), layer_map),           # self-output dense W
            pl.BlockSpec((sq, H, I), layer_map),           # intermediate dense W
            pl.BlockSpec((sq, I, H), layer_map),           # FFN output dense W
            pl.BlockSpec((sq, VEC_ROWS, VEC_WIDTH), layer_map),  # packed vectors
        ],
        out_specs=pl.BlockSpec((sq, S, H), batch_map),     # resident across layers
        compiler_params=pltpu.CompilerParams(
            dimension_semantics=("parallel", "arbitrary")),
    )(hidden_states, attention_mask, packed["wqkv"], packed["wo"],
      packed["wi"], packed["w2"], packed["vecs"])

    return out   # last_hidden_state, (B, S, H)


# ----------------------------- pure-JAX reference ---------------------------
def bert_layer_ref(x, mask, p):
    B, S, H = x.shape
    q = x @ p["wq"] + p["bq"]
    k = x @ p["wk"] + p["bk"]
    v = x @ p["wv"] + p["bv"]

    def split(t):
        return t.reshape(B, S, NUM_HEADS, HEAD_DIM).transpose(0, 2, 1, 3)

    qh, kh, vh = split(q), split(k), split(v)
    s = jnp.einsum("bhqd,bhkd->bhqk", qh, kh) / math.sqrt(HEAD_DIM)
    s = s + mask[:, :, None, :]
    pr = jax.nn.softmax(s, axis=-1)
    ctx = jnp.einsum("bhqk,bhkd->bhqd", pr, vh).transpose(0, 2, 1, 3).reshape(B, S, H)
    attn = ctx @ p["wo"] + p["bo"]
    h1 = _layer_norm(attn + x, p["g1"], p["be1"], LN_EPS)
    inter = _gelu(h1 @ p["wi"] + p["bi"])
    ffn = inter @ p["w2"] + p["b2"]
    return _layer_norm(ffn + h1, p["g2"], p["be2"], LN_EPS)


def bert_encoder_ref(x, mask, layer_params):
    h = x
    for p in layer_params:
        h = bert_layer_ref(h, mask, p)
    return h


# ----------------------------- param init -----------------------------------
def init_params(key):
    layers = []
    std = 0.02
    for _ in range(NUM_LAYERS):
        key, *ks = jax.random.split(key, 11)
        layers.append(dict(
            wq=jax.random.normal(ks[0], (HIDDEN, HIDDEN), jnp.float32) * std,
            bq=jax.random.normal(ks[1], (1, HIDDEN), jnp.float32) * std,
            wk=jax.random.normal(ks[2], (HIDDEN, HIDDEN), jnp.float32) * std,
            bk=jax.random.normal(ks[3], (1, HIDDEN), jnp.float32) * std,
            wv=jax.random.normal(ks[4], (HIDDEN, HIDDEN), jnp.float32) * std,
            bv=jax.random.normal(ks[5], (1, HIDDEN), jnp.float32) * std,
            wo=jax.random.normal(ks[6], (HIDDEN, HIDDEN), jnp.float32) * std,
            bo=jnp.zeros((1, HIDDEN), jnp.float32),
            g1=jnp.ones((1, HIDDEN), jnp.float32),
            be1=jnp.zeros((1, HIDDEN), jnp.float32),
            wi=jax.random.normal(ks[7], (HIDDEN, INTERMEDIATE), jnp.float32) * std,
            bi=jax.random.normal(ks[8], (1, INTERMEDIATE), jnp.float32) * std,
            w2=jax.random.normal(ks[9], (INTERMEDIATE, HIDDEN), jnp.float32) * std,
            b2=jnp.zeros((1, HIDDEN), jnp.float32),
            g2=jnp.ones((1, HIDDEN), jnp.float32),
            be2=jnp.zeros((1, HIDDEN), jnp.float32),
        ))
    return layers


# ----------------------------- main ------------------------------------------
if __name__ == "__main__":
    key = jax.random.PRNGKey(0)
    kx, kp = jax.random.split(key)

    hidden_states = jax.random.normal(kx, (BATCH, SEQ, HIDDEN), jnp.float32)
    # Additive extended attention mask: batch 1 masks out its last two keys.
    attention_mask = jnp.zeros((BATCH, 1, SEQ), jnp.float32)
    attention_mask = attention_mask.at[1, 0, SEQ - 2:].set(MASK_NEG)

    params = init_params(kp)

    out = bert_encoder_pallas(hidden_states, attention_mask, params)
    out = jax.block_until_ready(out)

    ref = bert_encoder_ref(hidden_states, attention_mask, params)
    err = float(jnp.max(jnp.abs(out - ref)))
    assert out.shape == (BATCH, SEQ, HIDDEN)
    # 2e-4 tolerance: the EUP approximate reciprocal in the softmax introduces
    # a tiny relative error vs. the exact-division reference.
    assert err < 2e-4, f"mismatch vs reference: {err}"

    print("KERNEL_OK")
</pallas_src>

<mosaic_0001>
module attributes {stable_mosaic.version = 11 : i64} {
  func.func @kernel(%arg0: i32, %arg1: i32, %arg2: memref<1x8x32xf32, #tpu.memory_space<vmem>>, %arg3: memref<1x1x8xf32, #tpu.memory_space<vmem>>, %arg4: memref<1x32x96xf32, #tpu.memory_space<vmem>>, %arg5: memref<1x32x32xf32, #tpu.memory_space<vmem>>, %arg6: memref<1x32x64xf32, #tpu.memory_space<vmem>>, %arg7: memref<1x64x32xf32, #tpu.memory_space<vmem>>, %arg8: memref<1x8x96xf32, #tpu.memory_space<vmem>>, %arg9: memref<1x8x32xf32, #tpu.memory_space<vmem>>) attributes {dimension_semantics = [#tpu.dimension_semantics<parallel>, #tpu.dimension_semantics<arbitrary>], iteration_bounds = array<i64: 2, 2>, scalar_prefetch = 0 : i64, scratch_operands = 0 : i64, tpu.core_type = #tpu.core_type<tc>, window_params = [{transform_indices = @transform_0, window_bounds = array<i64: 1, 8, 32>}, {transform_indices = @transform_1, window_bounds = array<i64: 1, 1, 8>}, {transform_indices = @transform_2, window_bounds = array<i64: 1, 32, 96>}, {transform_indices = @transform_3, window_bounds = array<i64: 1, 32, 32>}, {transform_indices = @transform_4, window_bounds = array<i64: 1, 32, 64>}, {transform_indices = @transform_5, window_bounds = array<i64: 1, 64, 32>}, {transform_indices = @transform_6, window_bounds = array<i64: 1, 8, 96>}, {transform_indices = @transform_7, window_bounds = array<i64: 1, 8, 32>}]} {
    %c0_i32 = arith.constant 0 : i32
    %0 = arith.cmpi eq, %arg1, %c0_i32 : i32
    %1 = arith.extui %0 : i1 to i32
    %c0_i32_0 = arith.constant 0 : i32
    %2 = arith.cmpi ne, %1, %c0_i32_0 : i32
    scf.if %2 {
      %c0_57 = arith.constant 0 : index
      %c0_58 = arith.constant 0 : index
      %c0_59 = arith.constant 0 : index
      %168 = vector.load %arg2[%c0_57, %c0_58, %c0_59] : memref<1x8x32xf32, #tpu.memory_space<vmem>>, vector<1x8x32xf32>
      %169 = vector.shape_cast %168 : vector<1x8x32xf32> to vector<8x32xf32>
      %c0_60 = arith.constant 0 : index
      %c0_61 = arith.constant 0 : index
      %c0_62 = arith.constant 0 : index
      %170 = vector.load %arg9[%c0_60, %c0_61, %c0_62] : memref<1x8x32xf32, #tpu.memory_space<vmem>>, vector<1x8x32xf32>
      %171 = vector.shape_cast %170 : vector<1x8x32xf32> to vector<8x32xf32>
      %172 = vector.shape_cast %169 : vector<8x32xf32> to vector<1x8x32xf32>
      tpu.vector_store %arg9[%c0_60, %c0_61, %c0_62], %172 {strides = array<i32>} : memref<1x8x32xf32, #tpu.memory_space<vmem>>, vector<1x8x32xf32>,
    } else {
    }
    %c0 = arith.constant 0 : index
    %c0_1 = arith.constant 0 : index
    %c0_2 = arith.constant 0 : index
    %3 = vector.load %arg9[%c0, %c0_1, %c0_2] : memref<1x8x32xf32, #tpu.memory_space<vmem>>, vector<1x8x32xf32>
    %4 = vector.shape_cast %3 : vector<1x8x32xf32> to vector<8x32xf32>
    %c0_3 = arith.constant 0 : index
    %c0_4 = arith.constant 0 : index
    %c0_5 = arith.constant 0 : index
    %5 = vector.load %arg3[%c0_3, %c0_4, %c0_5] : memref<1x1x8xf32, #tpu.memory_space<vmem>>, vector<1x1x8xf32>
    %6 = vector.shape_cast %5 : vector<1x1x8xf32> to vector<1x8xf32>
    %c0_6 = arith.constant 0 : index
    %c0_7 = arith.constant 0 : index
    %c0_8 = arith.constant 0 : index
    %7 = vector.load %arg4[%c0_6, %c0_7, %c0_8] : memref<1x32x96xf32, #tpu.memory_space<vmem>>, vector<1x32x96xf32>
    %8 = vector.shape_cast %7 : vector<1x32x96xf32> to vector<32x96xf32>
    %c0_9 = arith.constant 0 : index
    %c0_10 = arith.constant 0 : index
    %c0_11 = arith.constant 0 : index
    %9 = vector.load %arg5[%c0_9, %c0_10, %c0_11] : memref<1x32x32xf32, #tpu.memory_space<vmem>>, vector<1x32x32xf32>
    %10 = vector.shape_cast %9 : vector<1x32x32xf32> to vector<32x32xf32>
    %c0_12 = arith.constant 0 : index
    %c0_13 = arith.constant 0 : index
    %c0_14 = arith.constant 0 : index
    %11 = vector.load %arg6[%c0_12, %c0_13, %c0_14] : memref<1x32x64xf32, #tpu.memory_space<vmem>>, vector<1x32x64xf32>
    %12 = vector.shape_cast %11 : vector<1x32x64xf32> to vector<32x64xf32>
    %c0_15 = arith.constant 0 : index
    %c0_16 = arith.constant 0 : index
    %c0_17 = arith.constant 0 : index
    %13 = vector.load %arg7[%c0_15, %c0_16, %c0_17] : memref<1x64x32xf32, #tpu.memory_space<vmem>>, vector<1x64x32xf32>
    %14 = vector.shape_cast %13 : vector<1x64x32xf32> to vector<64x32xf32>
    %c0_18 = arith.constant 0 : index
    %c0_19 = arith.constant 0 : index
    %c0_20 = arith.constant 0 : index
    %15 = vector.load %arg8[%c0_18, %c0_19, %c0_20] : memref<1x8x96xf32, #tpu.memory_space<vmem>>, vector<1x8x96xf32>
    %16 = vector.shape_cast %15 : vector<1x8x96xf32> to vector<8x96xf32>
    %17 = vector.extract_strided_slice %16 {offsets = [0, 0], sizes = [1, 96], strides = [1, 1]} : vector<8x96xf32> to vector<1x96xf32>
    %18 = vector.extract_strided_slice %16 {offsets = [1, 0], sizes = [1, 64], strides = [1, 1]} : vector<8x96xf32> to vector<1x64xf32>
    %19 = vector.extract_strided_slice %16 {offsets = [2, 0], sizes = [1, 32], strides = [1, 1]} : vector<8x96xf32> to vector<1x32xf32>
    %20 = vector.extract_strided_slice %16 {offsets = [3, 0], sizes = [1, 32], strides = [1, 1]} : vector<8x96xf32> to vector<1x32xf32>
    %21 = vector.extract_strided_slice %16 {offsets = [4, 0], sizes = [1, 32], strides = [1, 1]} : vector<8x96xf32> to vector<1x32xf32>
    %22 = vector.extract_strided_slice %16 {offsets = [5, 0], sizes = [1, 32], strides = [1, 1]} : vector<8x96xf32> to vector<1x32xf32>
    %23 = vector.extract_strided_slice %16 {offsets = [6, 0], sizes = [1, 32], strides = [1, 1]} : vector<8x96xf32> to vector<1x32xf32>
    %24 = vector.extract_strided_slice %16 {offsets = [7, 0], sizes = [1, 32], strides = [1, 1]} : vector<8x96xf32> to vector<1x32xf32>
    %cst = arith.constant dense<0.000000e+00> : vector<8x96xf32>
    %25 = tpu.matmul %4, %8, %cst {dimension_numbers = #tpu.dot_dimension_numbers<[1], [0], [0], [1], [0, 0, 1, 1], [], []>} : vector<8x32xf32>, vector<32x96xf32>, vector<8x96xf32> -> vector<8x96xf32>
    %26 = vector.broadcast %17 : vector<1x96xf32> to vector<8x96xf32>
    %27 = arith.addf %25, %26 : vector<8x96xf32>
    %28 = vector.extract_strided_slice %27 {offsets = [0, 0], sizes = [8, 8], strides = [1, 1]} : vector<8x96xf32> to vector<8x8xf32>
    %29 = vector.extract_strided_slice %27 {offsets = [0, 32], sizes = [8, 8], strides = [1, 1]} : vector<8x96xf32> to vector<8x8xf32>
    %30 = vector.extract_strided_slice %27 {offsets = [0, 64], sizes = [8, 8], strides = [1, 1]} : vector<8x96xf32> to vector<8x8xf32>
    "tpu.trace_start"() <{level = 10 : i32, message = "qd,kd->qk"}> : () -> ()
    %cst_21 = arith.constant dense<0.000000e+00> : vector<8x8xf32>
    %31 = tpu.matmul %28, %29, %cst_21 {dimension_numbers = #tpu.dot_dimension_numbers<[1], [1], [0], [0], [0, 0, 1, 0], [], []>} : vector<8x8xf32>, vector<8x8xf32>, vector<8x8xf32> -> vector<8x8xf32>
    "tpu.trace_stop"() : () -> ()
    %32 = vector.broadcast %6 : vector<1x8xf32> to vector<8x8xf32>
    %33 = arith.addf %31, %32 : vector<8x8xf32>
    %cst_22 = arith.constant dense<0xFF800000> : vector<8xf32>
    %34 = vector.multi_reduction <maximumf>, %33, %cst_22 [1] : vector<8x8xf32> to vector<8xf32>
    %35 = vector.shape_cast %34 : vector<8xf32> to vector<8x1xf32>
    %36 = vector.broadcast %35 : vector<8x1xf32> to vector<8x8xf32>
    %37 = arith.subf %33, %36 : vector<8x8xf32>
    %38 = math.exp %37 : vector<8x8xf32>
    %cst_23 = arith.constant dense<0.000000e+00> : vector<8xf32>
    %39 = vector.multi_reduction <add>, %38, %cst_23 [1] : vector<8x8xf32> to vector<8xf32>
    %40 = vector.shape_cast %39 : vector<8xf32> to vector<8x1xf32>
    %41 = tpu.reciprocal %40 {approx = true} : vector<8x1xf32> -> vector<8x1xf32>
    %42 = vector.broadcast %41 : vector<8x1xf32> to vector<8x8xf32>
    %43 = arith.mulf %38, %42 : vector<8x8xf32>
    %cst_24 = arith.constant dense<0.000000e+00> : vector<8x8xf32>
    %44 = tpu.matmul %43, %30, %cst_24 {dimension_numbers = #tpu.dot_dimension_numbers<[1], [0], [0], [1], [0, 0, 1, 1], [], []>} : vector<8x8xf32>, vector<8x8xf32>, vector<8x8xf32> -> vector<8x8xf32>
    %45 = vector.extract_strided_slice %27 {offsets = [0, 8], sizes = [8, 8], strides = [1, 1]} : vector<8x96xf32> to vector<8x8xf32>
    %46 = vector.extract_strided_slice %27 {offsets = [0, 40], sizes = [8, 8], strides = [1, 1]} : vector<8x96xf32> to vector<8x8xf32>
    %47 = vector.extract_strided_slice %27 {offsets = [0, 72], sizes = [8, 8], strides = [1, 1]} : vector<8x96xf32> to vector<8x8xf32>
    "tpu.trace_start"() <{level = 10 : i32, message = "qd,kd->qk"}> : () -> ()
    %cst_25 = arith.constant dense<0.000000e+00> : vector<8x8xf32>
    %48 = tpu.matmul %45, %46, %cst_25 {dimension_numbers = #tpu.dot_dimension_numbers<[1], [1], [0], [0], [0, 0, 1, 0], [], []>} : vector<8x8xf32>, vector<8x8xf32>, vector<8x8xf32> -> vector<8x8xf32>
    "tpu.trace_stop"() : () -> ()
    %49 = vector.broadcast %6 : vector<1x8xf32> to vector<8x8xf32>
    %50 = arith.addf %48, %49 : vector<8x8xf32>
    %cst_26 = arith.constant dense<0xFF800000> : vector<8xf32>
    %51 = vector.multi_reduction <maximumf>, %50, %cst_26 [1] : vector<8x8xf32> to vector<8xf32>
    %52 = vector.shape_cast %51 : vector<8xf32> to vector<8x1xf32>
    %53 = vector.broadcast %52 : vector<8x1xf32> to vector<8x8xf32>
    %54 = arith.subf %50, %53 : vector<8x8xf32>
    %55 = math.exp %54 : vector<8x8xf32>
    %cst_27 = arith.constant dense<0.000000e+00> : vector<8xf32>
    %56 = vector.multi_reduction <add>, %55, %cst_27 [1] : vector<8x8xf32> to vector<8xf32>
    %57 = vector.shape_cast %56 : vector<8xf32> to vector<8x1xf32>
    %58 = tpu.reciprocal %57 {approx = true} : vector<8x1xf32> -> vector<8x1xf32>
    %59 = vector.broadcast %58 : vector<8x1xf32> to vector<8x8xf32>
    %60 = arith.mulf %55, %59 : vector<8x8xf32>
    %cst_28 = arith.constant dense<0.000000e+00> : vector<8x8xf32>
    %61 = tpu.matmul %60, %47, %cst_28 {dimension_numbers = #tpu.dot_dimension_numbers<[1], [0], [0], [1], [0, 0, 1, 1], [], []>} : vector<8x8xf32>, vector<8x8xf32>, vector<8x8xf32> -> vector<8x8xf32>
    %62 = vector.extract_strided_slice %27 {offsets = [0, 16], sizes = [8, 8], strides = [1, 1]} : vector<8x96xf32> to vector<8x8xf32>
    %63 = vector.extract_strided_slice %27 {offsets = [0, 48], sizes = [8, 8], strides = [1, 1]} : vector<8x96xf32> to vector<8x8xf32>
    %64 = vector.extract_strided_slice %27 {offsets = [0, 80], sizes = [8, 8], strides = [1, 1]} : vector<8x96xf32> to vector<8x8xf32>
    "tpu.trace_start"() <{level = 10 : i32, message = "qd,kd->qk"}> : () -> ()
    %cst_29 = arith.constant dense<0.000000e+00> : vector<8x8xf32>
    %65 = tpu.matmul %62, %63, %cst_29 {dimension_numbers = #tpu.dot_dimension_numbers<[1], [1], [0], [0], [0, 0, 1, 0], [], []>} : vector<8x8xf32>, vector<8x8xf32>, vector<8x8xf32> -> vector<8x8xf32>
    "tpu.trace_stop"() : () -> ()
    %66 = vector.broadcast %6 : vector<1x8xf32> to vector<8x8xf32>
    %67 = arith.addf %65, %66 : vector<8x8xf32>
    %cst_30 = arith.constant dense<0xFF800000> : vector<8xf32>
    %68 = vector.multi_reduction <maximumf>, %67, %cst_30 [1] : vector<8x8xf32> to vector<8xf32>
    %69 = vector.shape_cast %68 : vector<8xf32> to vector<8x1xf32>
    %70 = vector.broadcast %69 : vector<8x1xf32> to vector<8x8xf32>
    %71 = arith.subf %67, %70 : vector<8x8xf32>
    %72 = math.exp %71 : vector<8x8xf32>
    %cst_31 = arith.constant dense<0.000000e+00> : vector<8xf32>
    %73 = vector.multi_reduction <add>, %72, %cst_31 [1] : vector<8x8xf32> to vector<8xf32>
    %74 = vector.shape_cast %73 : vector<8xf32> to vector<8x1xf32>
    %75 = tpu.reciprocal %74 {approx = true} : vector<8x1xf32> -> vector<8x1xf32>
    %76 = vector.broadcast %75 : vector<8x1xf32> to vector<8x8xf32>
    %77 = arith.mulf %72, %76 : vector<8x8xf32>
    %cst_32 = arith.constant dense<0.000000e+00> : vector<8x8xf32>
    %78 = tpu.matmul %77, %64, %cst_32 {dimension_numbers = #tpu.dot_dimension_numbers<[1], [0], [0], [1], [0, 0, 1, 1], [], []>} : vector<8x8xf32>, vector<8x8xf32>, vector<8x8xf32> -> vector<8x8xf32>
    %79 = vector.extract_strided_slice %27 {offsets = [0, 24], sizes = [8, 8], strides = [1, 1]} : vector<8x96xf32> to vector<8x8xf32>
    %80 = vector.extract_strided_slice %27 {offsets = [0, 56], sizes = [8, 8], strides = [1, 1]} : vector<8x96xf32> to vector<8x8xf32>
    %81 = vector.extract_strided_slice %27 {offsets = [0, 88], sizes = [8, 8], strides = [1, 1]} : vector<8x96xf32> to vector<8x8xf32>
    "tpu.trace_start"() <{level = 10 : i32, message = "qd,kd->qk"}> : () -> ()
    %cst_33 = arith.constant dense<0.000000e+00> : vector<8x8xf32>
    %82 = tpu.matmul %79, %80, %cst_33 {dimension_numbers = #tpu.dot_dimension_numbers<[1], [1], [0], [0], [0, 0, 1, 0], [], []>} : vector<8x8xf32>, vector<8x8xf32>, vector<8x8xf32> -> vector<8x8xf32>
    "tpu.trace_stop"() : () -> ()
    %83 = vector.broadcast %6 : vector<1x8xf32> to vector<8x8xf32>
    %84 = arith.addf %82, %83 : vector<8x8xf32>
    %cst_34 = arith.constant dense<0xFF800000> : vector<8xf32>
    %85 = vector.multi_reduction <maximumf>, %84, %cst_34 [1] : vector<8x8xf32> to vector<8xf32>
    %86 = vector.shape_cast %85 : vector<8xf32> to vector<8x1xf32>
    %87 = vector.broadcast %86 : vector<8x1xf32> to vector<8x8xf32>
    %88 = arith.subf %84, %87 : vector<8x8xf32>
    %89 = math.exp %88 : vector<8x8xf32>
    %cst_35 = arith.constant dense<0.000000e+00> : vector<8xf32>
    %90 = vector.multi_reduction <add>, %89, %cst_35 [1] : vector<8x8xf32> to vector<8xf32>
    %91 = vector.shape_cast %90 : vector<8xf32> to vector<8x1xf32>
    %92 = tpu.reciprocal %91 {approx = true} : vector<8x1xf32> -> vector<8x1xf32>
    %93 = vector.broadcast %92 : vector<8x1xf32> to vector<8x8xf32>
    %94 = arith.mulf %89, %93 : vector<8x8xf32>
    %cst_36 = arith.constant dense<0.000000e+00> : vector<8x8xf32>
    %95 = tpu.matmul %94, %81, %cst_36 {dimension_numbers = #tpu.dot_dimension_numbers<[1], [0], [0], [1], [0, 0, 1, 1], [], []>} : vector<8x8xf32>, vector<8x8xf32>, vector<8x8xf32> -> vector<8x8xf32>
    %96 = tpu.concatenate %44, %61, %78, %95 in 1 : vector<8x8xf32>, vector<8x8xf32>, vector<8x8xf32>, vector<8x8xf32> -> vector<8x32xf32>
    %cst_37 = arith.constant dense<0.000000e+00> : vector<8x32xf32>
    %97 = tpu.matmul %96, %10, %cst_37 {dimension_numbers = #tpu.dot_dimension_numbers<[1], [0], [0], [1], [0, 0, 1, 1], [], []>} : vector<8x32xf32>, vector<32x32xf32>, vector<8x32xf32> -> vector<8x32xf32>
    %98 = vector.broadcast %19 : vector<1x32xf32> to vector<8x32xf32>
    %99 = arith.addf %97, %98 : vector<8x32xf32>
    %100 = arith.addf %99, %4 : vector<8x32xf32>
    %cst_38 = arith.constant dense<0.000000e+00> : vector<8xf32>
    %101 = vector.multi_reduction <add>, %100, %cst_38 [1] : vector<8x32xf32> to vector<8xf32>
    %102 = vector.shape_cast %101 : vector<8xf32> to vector<8x1xf32>
    %cst_39 = arith.constant 3.200000e+01 : f32
    %103 = vector.broadcast %cst_39 : f32 to vector<8x1xf32>
    %104 = arith.divf %102, %103 : vector<8x1xf32>
    %105 = vector.broadcast %104 : vector<8x1xf32> to vector<8x32xf32>
    %106 = arith.subf %100, %105 : vector<8x32xf32>
    %107 = arith.mulf %106, %106 : vector<8x32xf32>
    %cst_40 = arith.constant dense<0.000000e+00> : vector<8xf32>
    %108 = vector.multi_reduction <add>, %107, %cst_40 [1] : vector<8x32xf32> to vector<8xf32>
    %109 = vector.shape_cast %108 : vector<8xf32> to vector<8x1xf32>
    %cst_41 = arith.constant 3.200000e+01 : f32
    %110 = vector.broadcast %cst_41 : f32 to vector<8x1xf32>
    %111 = arith.divf %109, %110 : vector<8x1xf32>
    %112 = vector.broadcast %104 : vector<8x1xf32> to vector<8x32xf32>
    %113 = arith.subf %100, %112 : vector<8x32xf32>
    %cst_42 = arith.constant 9.99999996E-13 : f32
    %114 = vector.broadcast %cst_42 : f32 to vector<8x1xf32>
    %115 = arith.addf %111, %114 : vector<8x1xf32>
    %116 = math.rsqrt %115 : vector<8x1xf32>
    %117 = vector.broadcast %116 : vector<8x1xf32> to vector<8x32xf32>
    %118 = arith.mulf %113, %117 : vector<8x32xf32>
    %119 = vector.broadcast %20 : vector<1x32xf32> to vector<8x32xf32>
    %120 = arith.mulf %118, %119 : vector<8x32xf32>
    %121 = vector.broadcast %21 : vector<1x32xf32> to vector<8x32xf32>
    %122 = arith.addf %120, %121 : vector<8x32xf32>
    %cst_43 = arith.constant dense<0.000000e+00> : vector<8x64xf32>
    %123 = tpu.matmul %122, %12, %cst_43 {dimension_numbers = #tpu.dot_dimension_numbers<[1], [0], [0], [1], [0, 0, 1, 1], [], []>} : vector<8x32xf32>, vector<32x64xf32>, vector<8x64xf32> -> vector<8x64xf32>
    %124 = vector.broadcast %18 : vector<1x64xf32> to vector<8x64xf32>
    %125 = arith.addf %123, %124 : vector<8x64xf32>
    %cst_44 = arith.constant 5.000000e-01 : f32
    %126 = vector.broadcast %cst_44 : f32 to vector<8x64xf32>
    %127 = arith.mulf %126, %125 : vector<8x64xf32>
    %cst_45 = arith.constant 4.471500e-02 : f32
    %128 = vector.broadcast %cst_45 : f32 to vector<8x64xf32>
    %129 = arith.mulf %128, %125 : vector<8x64xf32>
    %130 = arith.mulf %129, %125 : vector<8x64xf32>
    %131 = arith.mulf %130, %125 : vector<8x64xf32>
    %132 = arith.addf %125, %131 : vector<8x64xf32>
    %cst_46 = arith.constant 0.797884583 : f32
    %133 = vector.broadcast %cst_46 : f32 to vector<8x64xf32>
    %134 = arith.mulf %133, %132 : vector<8x64xf32>
    %135 = math.tanh %134 : vector<8x64xf32>
    %cst_47 = arith.constant 1.000000e+00 : f32
    %136 = vector.broadcast %cst_47 : f32 to vector<8x64xf32>
    %137 = arith.addf %136, %135 : vector<8x64xf32>
    %138 = arith.mulf %127, %137 : vector<8x64xf32>
    %cst_48 = arith.constant dense<0.000000e+00> : vector<8x32xf32>
    %139 = tpu.matmul %138, %14, %cst_48 {dimension_numbers = #tpu.dot_dimension_numbers<[1], [0], [0], [1], [0, 0, 1, 1], [], []>} : vector<8x64xf32>, vector<64x32xf32>, vector<8x32xf32> -> vector<8x32xf32>
    %140 = vector.broadcast %22 : vector<1x32xf32> to vector<8x32xf32>
    %141 = arith.addf %139, %140 : vector<8x32xf32>
    %142 = arith.addf %141, %122 : vector<8x32xf32>
    %cst_49 = arith.constant dense<0.000000e+00> : vector<8xf32>
    %143 = vector.multi_reduction <add>, %142, %cst_49 [1] : vector<8x32xf32> to vector<8xf32>
    %144 = vector.shape_cast %143 : vector<8xf32> to vector<8x1xf32>
    %cst_50 = arith.constant 3.200000e+01 : f32
    %145 = vector.broadcast %cst_50 : f32 to vector<8x1xf32>
    %146 = arith.divf %144, %145 : vector<8x1xf32>
    %147 = vector.broadcast %146 : vector<8x1xf32> to vector<8x32xf32>
    %148 = arith.subf %142, %147 : vector<8x32xf32>
    %149 = arith.mulf %148, %148 : vector<8x32xf32>
    %cst_51 = arith.constant dense<0.000000e+00> : vector<8xf32>
    %150 = vector.multi_reduction <add>, %149, %cst_51 [1] : vector<8x32xf32> to vector<8xf32>
    %151 = vector.shape_cast %150 : vector<8xf32> to vector<8x1xf32>
    %cst_52 = arith.constant 3.200000e+01 : f32
    %152 = vector.broadcast %cst_52 : f32 to vector<8x1xf32>
    %153 = arith.divf %151, %152 : vector<8x1xf32>
    %154 = vector.broadcast %146 : vector<8x1xf32> to vector<8x32xf32>
    %155 = arith.subf %142, %154 : vector<8x32xf32>
    %cst_53 = arith.constant 9.99999996E-13 : f32
    %156 = vector.broadcast %cst_53 : f32 to vector<8x1xf32>
    %157 = arith.addf %153, %156 : vector<8x1xf32>
    %158 = math.rsqrt %157 : vector<8x1xf32>
    %159 = vector.broadcast %158 : vector<8x1xf32> to vector<8x32xf32>
    %160 = arith.mulf %155, %159 : vector<8x32xf32>
    %161 = vector.broadcast %23 : vector<1x32xf32> to vector<8x32xf32>
    %162 = arith.mulf %160, %161 : vector<8x32xf32>
    %163 = vector.broadcast %24 : vector<1x32xf32> to vector<8x32xf32>
    %164 = arith.addf %162, %163 : vector<8x32xf32>
    %c0_54 = arith.constant 0 : index
    %c0_55 = arith.constant 0 : index
    %c0_56 = arith.constant 0 : index
    %165 = vector.load %arg9[%c0_54, %c0_55, %c0_56] : memref<1x8x32xf32, #tpu.memory_space<vmem>>, vector<1x8x32xf32>
    %166 = vector.shape_cast %165 : vector<1x8x32xf32> to vector<8x32xf32>
    %167 = vector.shape_cast %164 : vector<8x32xf32> to vector<1x8x32xf32>
    tpu.vector_store %arg9[%c0_54, %c0_55, %c0_56], %167 {strides = array<i32>} : memref<1x8x32xf32, #tpu.memory_space<vmem>>, vector<1x8x32xf32>,
    return
  }
  func.func @transform_0(%arg0: i32, %arg1: i32) -> (i32, i32, i32) {
    %c0_i32 = arith.constant 0 : i32
    %c0_i32_0 = arith.constant 0 : i32
    %c0_i32_1 = arith.constant 0 : i32
    return %arg0, %c0_i32, %c0_i32_0 : i32, i32, i32
  }
  func.func @transform_1(%arg0: i32, %arg1: i32) -> (i32, i32, i32) {
    %c0_i32 = arith.constant 0 : i32
    %c0_i32_0 = arith.constant 0 : i32
    %c0_i32_1 = arith.constant 0 : i32
    return %arg0, %c0_i32, %c0_i32_0 : i32, i32, i32
  }
  func.func @transform_2(%arg0: i32, %arg1: i32) -> (i32, i32, i32) {
    %c0_i32 = arith.constant 0 : i32
    %c0_i32_0 = arith.constant 0 : i32
    %c0_i32_1 = arith.constant 0 : i32
    return %arg1, %c0_i32, %c0_i32_0 : i32, i32, i32
  }
  func.func @transform_3(%arg0: i32, %arg1: i32) -> (i32, i32, i32) {
    %c0_i32 = arith.constant 0 : i32
    %c0_i32_0 = arith.constant 0 : i32
    %c0_i32_1 = arith.constant 0 : i32
    return %arg1, %c0_i32, %c0_i32_0 : i32, i32, i32
  }
  func.func @transform_4(%arg0: i32, %arg1: i32) -> (i32, i32, i32) {
    %c0_i32 = arith.constant 0 : i32
    %c0_i32_0 = arith.constant 0 : i32
    %c0_i32_1 = arith.constant 0 : i32
    return %arg1, %c0_i32, %c0_i32_0 : i32, i32, i32
  }
  func.func @transform_5(%arg0: i32, %arg1: i32) -> (i32, i32, i32) {
    %c0_i32 = arith.constant 0 : i32
    %c0_i32_0 = arith.constant 0 : i32
    %c0_i32_1 = arith.constant 0 : i32
    return %arg1, %c0_i32, %c0_i32_0 : i32, i32, i32
  }
  func.func @transform_6(%arg0: i32, %arg1: i32) -> (i32, i32, i32) {
    %c0_i32 = arith.constant 0 : i32
    %c0_i32_0 = arith.constant 0 : i32
    %c0_i32_1 = arith.constant 0 : i32
    return %arg1, %c0_i32, %c0_i32_0 : i32, i32, i32
  }
  func.func @transform_7(%arg0: i32, %arg1: i32) -> (i32, i32, i32) {
    %c0_i32 = arith.constant 0 : i32
    %c0_i32_0 = arith.constant 0 : i32
    %c0_i32_1 = arith.constant 0 : i32
    return %arg0, %c0_i32, %c0_i32_0 : i32, i32, i32
  }
}

</mosaic_0001>

<bundles_post_ra>
// kernel: tpu_custom_call.1
= control target key start
LH: loop header
LB: loop body
LE: loop exit
PB: predicated region body
PF: predicated region fallthrough
CT: control target
= control target key end

     0   :  { %s2536_s0 = inlined_call_operand.hbm [shape: f32[2,8,32], index: 0, kind: input, shape index: {}]   ;;  %s2537_s1 = inlined_call_operand.vmem [shape: f32[2,1,8], index: 1, kind: input, shape index: {}]   ;;  %s2538_s2 = inlined_call_operand.vmem [shape: f32[2,32,96], index: 2, kind: input, shape index: {}]   ;;  %s2539_s3 = inlined_call_operand.vmem [shape: f32[2,32,32], index: 3, kind: input, shape index: {}]   ;;  %s2540_s4 = inlined_call_operand.vmem [shape: f32[2,32,64], index: 4, kind: input, shape index: {}]   ;;  %s2541_s5 = inlined_call_operand.vmem [shape: f32[2,64,32], index: 5, kind: input, shape index: {}]   ;;  %s2542_s6 = inlined_call_operand.vmem [shape: f32[2,8,96], index: 6, kind: input, shape index: {}]   ;;  %s2543_s7 = inlined_call_operand.hbm [shape: f32[2,8,32], index: 7, kind: output, shape index: {}]  }
   0x1   :  { %2555 = sst [smem:[#allocation18_spill]] %s2536_s0 }
   0x2   :  { %2556 = sst [smem:[#allocation19_spill]] %s2543_s7 }
   0x3   :  { %12 = vsyncpa [#allocation3], 0 }
   0x4   :  { %14 = vsyncpa [#allocation3 + $0x1], 0 }
   0x5   :  { %15 = vsyncpa [#allocation4], 0 }
   0x6   :  { %17 = vsyncpa [#allocation4 + $0x1], 0  ;;  %s2175_s24 = smov 0   ;;  %s2177_s25 = smov 0  }
   0x7   :  { %s2179_s26 = smov 0   ;;  %s2181_s27 = smov 0  }
   0x8   :  { %s2183_s28 = smov 0   ;;  %s2185_s29 = smov 0  }
   0x9   :  { %s2187_s30 = smov 0   ;;  %s2189_s8 = smov 0  }
   0xa LB: > { %2557 = sst [smem:[#allocation8_spill]] %s2086_s24  ;;  %s1663_s9 = sadd.s32 4294967295, %s2114_s8   ;;  %s2114_s8 = sphi %s2189_s8, %s23_s8   ;;  %s2110_s30 = sphi %s2187_s30, %s2588_s30   ;;  %s2106_s29 = sphi %s2185_s29, %s2587_s29   ;;  %s2102_s28 = sphi %s2183_s28, %s2586_s28   ;;  %s2098_s27 = sphi %s2181_s27, %s2585_s27   ;;  %s2094_s26 = sphi %s2179_s26, %s2584_s26   ;;  %s2090_s25 = sphi %s2177_s25, %s2583_s25   ;;  %s2086_s24 = sphi %s2175_s24, %s2582_s24  }
   0xb   : > { %2558 = sst [smem:[#allocation9_spill]] %s2090_s25  ;;  %s1664_s10 = sadd.s32 4294967294, %s2114_s8  }
   0xc   : > { %2559 = sst [smem:[#allocation10_spill]] %s2094_s26  ;;  %s32_s11 = sadd.s32 1, %s2106_s29 }
   0xd   : > { %2560 = sst [smem:[#allocation11_spill]] %s2106_s29  ;;  %s35_s12 = sadd.s32 1, %s2110_s30 }
   0xe   : > { %2561 = sst [smem:[#allocation12_spill]] %s2110_s30  ;;  %p33_p0 = scmp.ge.s32.totalorder %s32_s11, 2 }
   0xf   : > { %2562 = sst [smem:[#allocation13_spill]] %s2114_s8  ;;  %s42_s13 = sadd.s32 1, %s2094_s26 }
  0x10   : > { %p49_p1 = scmp.ne.s32.totalorder %s2094_s26, %s2090_s25  ;;  %p50_p2 = scmp.eq.s32.totalorder %s2114_s8, 0 }
  0x11   : > { %s2590_s11 = smov (%p33_p0, %s32_s11), 0  ;;  %s2592_s12 = smov (!%p33_p0, %s35_s12), %s2110_s30 }
  0x12   : > { %2563 = sst [smem:[#allocation14_spill]] %s2590_s11  ;;  %p2226_p3 = por %p50_p2, %p49_p1 }
  0x13   : > { %p55_p4 = scmp.ne.s32.totalorder %s2090_s25, %s2086_s24  ;;  %p37_p5 = scmp.ge.s32.totalorder %s2592_s12, 2 }
  0x14   : > { %p56_p6 = scmp.eq.s32.totalorder %s1663_s9, 0  ;;  %p235_p7 = scmp.eq.s32.totalorder %s1663_s9, 3 }
  0x15   : > { %p241_p8 = scmp.eq.s32.totalorder %s1664_s10, 3  ;;  %s2594_s12 = smov (%p37_p5, %s2592_s12), 0 }
  0x16   : > { %2565 = sst [smem:[#allocation15_spill]] %s2594_s12  ;;  %p2234_p9 = por %p56_p6, %p55_p4 }
  0x17   : > { %p2238_p10 = por %p235_p7, %p49_p1  ;;  %s39_s17 = ssub.s32 %s2110_s30, %s2594_s12 }
  0x18   : > { %p2244_p11 = por %p241_p8, %p55_p4  ;;  %p40_p12 = scmp.eq.s32.totalorder %s39_s17, 0 }
  0x19   : > { %s2567_s16 = scalar_select %p2238_p10, 1, 0 }
  0x1a   : > { %s2568_s18 = scalar_select %p2244_p11, 1, 0 }
  0x1b   : > { %p1881_p13 = scmp.lt.s32.totalorder %s2114_s8, 4  ;;  %s261_s19 = sand.u32 1, %s2094_s26  }
  0x1c   : > { %2569 = sst [smem:[#allocation16_spill]] %s2568_s18  ;;  %s1667_s21 = sshll.u32 %s261_s19, 3 }
  0x1d   : > { %s2251_s20 = scalar_select %p40_p12, %s2094_s26, %s42_s13  }
  0x1e   : > { %s1668_s22 = sshll.u32 %s2110_s30, 7  ;;  %s2571_s0 = sld [smem:[#allocation18_spill]] }
  0x1f   : > { %2570 = sst [smem:[#allocation17_spill]] %s2251_s20  ;;  %s265_s12 = scalar_lea.vmem [#allocation2], %s1667_s21 }
  0x20   : > { %s272_s11 = sshll.u32 %s265_s12, 4  ;;  %p2263_p0 = pnand %p1881_p13, %p2226_p3  ;;  %s2259_s11 = int_to_ptr.vmem [resolvable:$true] %s272_s11 }
  0x21   : > { %s262_s13 = scalar_lea.sflag [#allocation3], %s261_s19 }
  0x22   : > { %p1988_p5 = pneg %p2263_p0 }
  0x24   : > { %s2257_s10 = scalar_lea.hbm %s2571_s0, %s1668_s22  ;;  %s1991_s14 = scalar_lea.hbm %s2571_s0, 256 }
  0x25   : > { %s1986_s22 = scalar_lea.hbm %s2257_s10, 128  ;;  %p1992_p3 = scmp.lt.u32.totalorder %s2257_s10, %s2571_s0 }
  0x26   : > { %p1987_p4 = scmp.ne.s32.totalorder %s2257_s10, %s1986_s22  ;;  %p1993_p8 = scmp.lt.u32.totalorder %s1991_s14, %s1986_s22 }
  0x27   : > { %p1995_p13 = scmp.lt.u32.totalorder %s1986_s22, %s2257_s10 }
  0x28   : > { %p1989_p6 = pnand %p1988_p5, %p1987_p4  ;;  %p1994_p12 = por %p1993_p8, %p1992_p3 }
  0x2a   : > { %p1990_p7 = pneg %p1989_p6  ;;  %p1996_p1 = por %p1995_p13, %p1994_p12 }
  0x2c   : > { %p1997_p2 = pnand %p1996_p1, %p1990_p7 }
  0x2e   : > { %2000 = shalt.err (!%p1997_p2)
}
  0x2f   : > { %s2001_s19 = scalar_lea.vmem %s2259_s11, 128  ;;  %s2116_s12 = smov [#allocation2]  }
  0x30   : > { %p2002_p4 = scmp.ne.s32.totalorder %s2259_s11, %s2001_s19  ;;  %s2006_s21 = sshll.u32 %s2116_s12, 4  ;;  %s2007_s21 = int_to_ptr.vmem [resolvable:$false] %s2006_s21 }
  0x31   : > { %s2008_s23 = scalar_lea.vmem %s2007_s21, 256  ;;  %p2009_p10 = scmp.lt.s32.totalorder %s2259_s11, %s2007_s21 }
  0x32   : > { %p2004_p6 = pnand %p2002_p4, %p1988_p5  ;;  %p2010_p3 = scmp.lt.s32.totalorder %s2008_s23, %s2001_s19 }
  0x34   : > { %p2005_p11 = pneg %p2004_p6  ;;  %p2011_p8 = por %p2010_p3, %p2009_p10 }
  0x36   : > { %p2012_p12 = pnand %p2011_p8, %p2005_p11 }
  0x38   : > { %2015 = shalt.err (!%p2012_p12)
}
  0x39   : > { %1876 = dma.hbm_to_vmem [thread:$0]  (!%p2263_p0), %s2257_s10, 128, %s2259_s11, %s262_s13  }
  0x3a   : > { %p2573_p1 = scmp.lt.s32.totalorder %s2114_s8, 5  ;;  %p2574_p2 = scmp.ge.s32.totalorder %s2114_s8, 1 }
  0x3c   : > { %p323_p5 = pnand %p2574_p2, %p2573_p1 }
  0x3d   : > { %s2299_s22 = sand.u32 (!%p323_p5), 1, %s2090_s25  }
  0x3e   : > { %326 = sbr.rel (%p323_p5) target bundleno = 2647 (0xa57), region = 48  ;;  %s1670_s14 = sshll.u32 (!%p323_p5), %s2299_s22, 3 }
  0x3f   : > { %s329_s9 = scalar_lea.sflag (!%p323_p5), [#allocation3], %s2299_s22  ;;  %s332_s19 = scalar_lea.vmem (!%p323_p5), [#allocation2], %s1670_s14 }
  0x45   : > { %2077 = dma.done.wait (%p2234_p9), %s329_s9, 128  }
  0x46   : > { %2079 = vsyncadd (%p2234_p9), %s329_s9, 4294967168  ;;  %p390_p10 = scmp.lt.s32.totalorder %s2102_s28, 1  ;;  %p393_p11 = scmp.lt.s32.totalorder %s2098_s27, 1 }
  0x47   : > { %s2340_s30 = scalar_lea.vmem [#allocation5], %s1670_s14  ;;  %p1681_p9 = scmp.ne.s32.totalorder %s2098_s27, 0 }
  0x48   : > { %s2310_s11 = scalar_select %p390_p10, %s2102_s28, 1 }
  0x49   : > { %s394_s10 = scalar_select %p393_p11, %s2098_s27, 1 }
  0x4a   : > { %420 = sbr.rel (%p1681_p9) target bundleno = 81 (0x51), region = 56  ;;  %v421_v0 = vld [vmem:[%s332_s19] sm:$0xff] (!%p1681_p9)  ;;  %vm422_vm0 = vcmask (!%p1681_p9), 261120  }
  0x4b   : > { %s1703_s21 = sshll.u32 %s394_s10, 5  ;;  %s1706_s23 = sshll.u32 %s394_s10, 6  ;;  %423 = vst.msk [vmem:[%s2340_s30] sm:$0xff] (!%p1681_p9), %vm422_vm0, %v421_v0 }
  0x4c   : > { %s397_s15 = scalar_lea.vmem %s2538_s2, %s1703_s21  ;;  %s2323_s20 = scalar_lea.vmem %s2539_s3, %s1703_s21 }
  0x4d   : > { %s2328_s18 = scalar_lea.vmem %s2540_s4, %s1703_s21  ;;  %s2333_s17 = scalar_lea.vmem %s2541_s5, %s1706_s23 }
  0x4e   : > { %s1680_s13 = sshll.u32 %s394_s10, 3 }
  0x4f   : > { %s2338_s0 = scalar_lea.vmem %s2542_s6, %s1680_s13 }
  0x51 PF: > { %v426_v1 = vld [vmem:[%s397_s15] sm:$0xff]  ;;  %v427_v2 = vld [vmem:[%s397_s15 + $0x8] sm:$0xff]  ;;  %v428_v3 = vld [vmem:[%s397_s15 + $0x10] sm:$0xff]  ;;  %v2117_v4 = vmov 0.0|0.0   ;;  %vm2118_vm1 = vmmov 0   ;;  %v2119_v7 = vmov 0.0   ;;  %v447_v10 = vlaneseq  ;;  %s2575_s10 = scalar_lea.vmem %s2537_s1, %s2310_s11 }
  0x52   : > { %1839 = vmatprep.subr.bf16.mxu1 %v2117_v4  ;;  %v1840_v5 = vpack.c.bf16 %v427_v2, %v426_v1  ;;  %v429_v6 = vld [vmem:[%s397_s15 + $0x18] sm:$0xff]  ;;  %1755 = vmatprep.mubr.msk.f32.mxu1 %vm2118_vm1, %v2119_v7  ;;  %vm451_vm2 = vcmask 261120   ;;  %v2363_v13 = vld [vmem:[%s2338_s0] sm:$0xff]  ;;  %s2120_s7 = smov 120   ;;  %s2121_s24 = smov 96   ;;  %vm534_vm3 = vcmask 64512  }
  0x53   : > { %1768 = vmatprep.subr.mxu0 %v2119_v7  ;;  %1770 = vmatprep.mubr.msk.f32.mxu0 %vm2118_vm1, %v2119_v7  ;;  %v1843_v8 = vpack.c.bf16 %v429_v6, %v428_v3  ;;  %v2352_v9 = vld [vmem:[%s2340_s30] sm:$0xff]  ;;  %v2359_v11 = vshrl.u32 %v447_v10, 7  ;;  %s2122_s25 = smov 80   ;;  %s2123_s26 = smov 88   ;;  %v1683_v25 = vld [vmem:[%s2575_s10] ss:$0 sm:$0xff] }
  0x54   : > { %1841 = vmatpush3.bf16.msra.mxu1 %v1840_v5  ;;  %s2124_s27 = smov 72   ;;  %s2125_s29 = smov 112   ;;  %vm1204_vm4 = vcmask 130048   ;;  %vm1206_vm5 = vcmask 195584   ;;  %vm1400_vm6 = vcmask 523264  }
  0x55   : > { %1842 = vmatprep.subr.bf16.mxu1 %v2117_v4  ;;  %v449_v12 = vsub.s32 0, %v2359_v11  ;;  %s2126_s8 = smov 104   ;;  %s2127_s11 = smov 56  }
  0x56   : > { %s2128_s12 = smov 64   ;;  %s2129_s21 = smov 48  }
  0x57   : > { %v450_v14 = vrot.slane %v2363_v13, %v449_v12  ;;  %s2130_s23 = smov 40   ;;  %s2131_s15 = smov 8  }
  0x58   : > { %1844 = vmatpush3.bf16.msra.mxu1 %v1843_v8  ;;  %s2132_s9 = smov 16   ;;  %s2133_s13 = smov 24  }
  0x59   : > { %1758 = vmatprep.subr.mxu1 %v2119_v7  ;;  %p2577_p7 = scmp.ne.s32.totalorder %s2567_s16, 0 }
  0x5b   : > { %1756 = vmatmul.mubr.msk.f32.vlgmr.msra.gmra.mrb[0].mxu1 %vm451_vm2, %v2352_v9 }
  0x5c   : > { %1760 = vmatprep.mubr.msk.f32.mxu1 %vm2118_vm1, %v2119_v7 }
 0x12e   : > { %v521_v15 = vpop.f32.mrb[0].mxu1 }
 0x12f   : > { %v2366_v16 = vadd.f32 %v521_v15, %v450_v14  ;;  %v1757_v17 = vpop.f32.mrb[1].mxu1 }
 0x131   : > { %696 = vrot.lane.b32.xlu1 %v2366_v16, %s2120_s7  ;;  %532 = vrot.lane.b32.xlu0 %v2366_v16, %s2121_s24  ;;  %s2576_s7 = sld [smem:[#allocation19_spill]] }
 0x135   : > { %863 = vrot.lane.b32.xlu1 %v2366_v16, %s2122_s25  ;;  %698 = vrot.lane.b32.xlu0 %v2366_v16, %s2123_s26  ;;  %s1500_s25 = scalar_lea.sflag [#allocation4], %s2299_s22 }
 0x139   : > { %1028 = vrot.lane.b32.xlu1 %v2366_v16, %s2124_s27  ;;  %861 = vrot.lane.b32.xlu0 %v2366_v16, %s2125_s29 }
 0x13d   : > { %1026 = vrot.lane.b32.xlu0 %v2366_v16, %s2126_s8 }
 0x1a3   : > { %v697_v18 = vpop.permute.xlu1 %696  ;;  %v533_v19 = vpop.permute.xlu0 %532 }
 0x1a4   : > { %1759 = vmatpush3.xpose.msk.msra.mxu1 %vm534_vm3, %v533_v19  ;;  %v430_v19 = vld [vmem:[%s2323_s20] sm:$0xff] }
 0x1a5   : > { %1763 = vmatprep.subr.mxu1 %v2119_v7 }
 0x1a7   : > { %1761 = vmatmul.mubr.msk.f32.vlgmr.msra.gmra.mrb[2].mxu1 %vm534_vm3, %v2366_v16  ;;  %v699_v20 = vpop.permute.xlu0 %698  ;;  %v864_v21 = vpop.permute.xlu1 %863 }
 0x1a8   : > { %1769 = vmatpush3.xpose.msk.msra.mxu0 %vm534_vm3, %v699_v20  ;;  %1765 = vmatprep.mubr.msk.f32.mxu1 %vm2118_vm1, %v2119_v7  ;;  %v431_v20 = vld [vmem:[%s2323_s20 + $0x8] sm:$0xff] }
 0x1a9   : > { %1778 = vmatprep.subr.mxu0 %v2119_v7 }
 0x1ab   : > { %1771 = vmatmul.mubr.msk.f32.vlgmr.msra.gmra.mrb[0].mxu0 %vm534_vm3, %v697_v18  ;;  %v862_v22 = vpop.permute.xlu0 %861  ;;  %v1029_v23 = vpop.permute.xlu1 %1028 }
 0x1ac   : > { %1779 = vmatpush3.xpose.msk.msra.mxu0 %vm534_vm3, %v864_v21  ;;  %1780 = vmatprep.mubr.msk.f32.mxu0 %vm2118_vm1, %v2119_v7  ;;  %v1846_v21 = vpack.c.bf16 %v431_v20, %v430_v19  ;;  %v1312_v19 = vsub.s32 1, %v2359_v11 }
 0x1ad   : > { %1788 = vmatprep.subr.mxu0 %v2119_v7 }
 0x1ae   : > { %v1313_v20 = vrot.slane %v2363_v13, %v1312_v19 }
 0x1af   : > { %1781 = vmatmul.mubr.msk.f32.vlgmr.msra.gmra.mrb[2].mxu0 %vm534_vm3, %v862_v22  ;;  %v1027_v24 = vpop.permute.xlu0 %1026 }
 0x1b0   : > { %1789 = vmatpush3.xpose.msk.msra.mxu0 %vm534_vm3, %v1029_v23  ;;  %1790 = vmatprep.mubr.msk.f32.mxu0 %vm2118_vm1, %v2119_v7 }
 0x1b1   : > { %1845 = vmatprep.subr.bf16.mxu0 %v2117_v4 }
 0x1b3   : > { %1791 = vmatmul.mubr.msk.f32.vlgmr.msra.gmra.mrb[4].mxu0 %vm534_vm3, %v1027_v24 }
 0x1b4   : > { %1806 = vmatprep.mubr.msk.f32.mxu0 %vm2118_vm1, %v2119_v7  ;;  %1847 = vmatpush3.bf16.msra.mxu0 %v1846_v21 }
 0x1b5   : > { %1848 = vmatprep.subr.bf16.mxu0 %v2117_v4 }
 0x27a   : > { %v605_v26 = vpop.f32.mrb[2].mxu1 }
 0x27b   : > { %v606_v27 = vadd.f32 %v1683_v25, %v605_v26  ;;  %v1762_v28 = vpop.f32.mrb[3].mxu1  ;;  %v432_v26 = vld [vmem:[%s2323_s20 + $0x10] sm:$0xff] }
 0x27d   : > { %v609_v29 = vsel %vm534_vm3, %v606_v27, -inf }
 0x27e   : > { %v770_v30 = vpop.f32.mrb[0].mxu0  ;;  %610 = vmax.xlane.f32.xlu1 %v609_v29 }
 0x27f   : > { %v771_v31 = vadd.f32 %v1683_v25, %v770_v30  ;;  %v1772_v32 = vpop.f32.mrb[1].mxu0 }
 0x281   : > { %v774_v33 = vsel %vm534_vm3, %v771_v31, -inf }
 0x282   : > { %775 = vmax.xlane.f32.xlu0 %v774_v33  ;;  %v935_v34 = vpop.f32.mrb[2].mxu0 }
 0x283   : > { %v936_v35 = vadd.f32 %v1683_v25, %v935_v34  ;;  %v1782_v36 = vpop.f32.mrb[3].mxu0 }
 0x285   : > { %v939_v37 = vsel %vm534_vm3, %v936_v35, -inf }
 0x286   : > { %940 = vmax.xlane.f32.xlu0 %v939_v37  ;;  %v1100_v38 = vpop.f32.mrb[4].mxu0 }
 0x287   : > { %v1101_v39 = vadd.f32 %v1683_v25, %v1100_v38  ;;  %v1792_v40 = vpop.f32.mrb[5].mxu0 }
 0x289   : > { %v1104_v41 = vsel %vm534_vm3, %v1101_v39, -inf }
 0x28a   : > { %1105 = vmax.xlane.f32.xlu1 %v1104_v41 }
 0x29b   : > { %785 = vrot.lane.b32.xlu1 %v2366_v16, %s2127_s11 }
 0x30b   : > { %v611_v42 = vpop.xlane.xlu1 %610 }
 0x30c   : > { %v612_v43 = vsub.f32 %v606_v27, %v611_v42  ;;  %v433_v27 = vld [vmem:[%s2323_s20 + $0x18] sm:$0xff]  ;;  %s1513_s20 = sshll.u32 %s2340_s30, 4  ;;  %s2482_s20 = int_to_ptr.vmem [resolvable:$true] %s1513_s20 }
 0x30d   : > { %v1849_v28 = vpack.c.bf16 %v433_v27, %v432_v26  ;;  %s2016_s26 = scalar_lea.vmem %s2482_s20, 128 }
 0x30e   : > { %v613_v44 = vmul.f32 1.442695, %v612_v43  ;;  %p2017_p0 = scmp.ne.s32.totalorder %s2482_s20, %s2016_s26 }
 0x30f   : > { %v776_v45 = vpop.xlane.xlu0 %775  ;;  %1850 = vmatpush3.bf16.msra.mxu0 %v1849_v28 }
 0x310   : > { %1964 = vpow2.f32 %v613_v44  ;;  %v777_v46 = vsub.f32 %v771_v31, %v776_v45  ;;  %1857 = vmatprep.subr.bf16.mxu0 %v2117_v4  ;;  %p2018_p13 = pnand %p2017_p0, %p2577_p7 }
 0x312   : > { %v778_v47 = vmul.f32 1.442695, %v777_v46  ;;  %p2019_p4 = pneg %p2018_p13 }
 0x313   : > { %v941_v57 = vpop.xlane.xlu0 %940 }
 0x314   : > { %1966 = vpow2.f32 %v778_v47  ;;  %v942_v58 = vsub.f32 %v936_v35, %v941_v57 }
 0x316   : > { %v943_v59 = vmul.f32 1.442695, %v942_v58  ;;  %v1302_v58 = vsub.s32 3, %v2359_v11 }
 0x317   : > { %v1106_v48 = vpop.xlane.xlu1 %1105 }
 0x318   : > { %v1107_v49 = vsub.f32 %v1101_v39, %v1106_v48  ;;  %v1210_v39 = vsub.s32 2, %v2359_v11 }
 0x31a   : > { %v1965_v50 = vpop.eup %1964  ;;  %v1108_v51 = vmul.f32 1.442695, %v1107_v49  ;;  %v1211_v40 = vrot.slane %v2363_v13, %v1210_v39 }
 0x31b   : > { %v615_v52 = vsel %vm534_vm3, %v1965_v50, 0.0  ;;  %v786_v62 = vpop.permute.xlu1 %785 }
 0x31c   : > { %1968 = vpow2.f32 %v1108_v51  ;;  %616 = vadd.xlane.f32.xlu0 %v615_v52  ;;  %v435_v51 = vld [vmem:[%s2328_s18 + $0x8] sm:$0xff] }
 0x31d   : > { %1970 = vpow2.f32 %v943_v59  ;;  %v1307_v59 = vsub.s32 4, %v2359_v11 }
 0x31e   : > { %v1967_v53 = vpop.eup %1966 }
 0x31f   : > { %v780_v54 = vsel %vm534_vm3, %v1967_v53, 0.0 }
 0x320   : > { %781 = vadd.xlane.f32.xlu1 %v780_v54  ;;  %v437_v54 = vld [vmem:[%s2328_s18 + $0x18] sm:$0xff] }
 0x326   : > { %v1969_v55 = vpop.eup %1968 }
 0x327   : > { %v1110_v56 = vsel %vm534_vm3, %v1969_v55, 0.0  ;;  %v1971_v60 = vpop.eup %1970 }
 0x328   : > { %1111 = vadd.xlane.f32.xlu1 %v1110_v56  ;;  %v945_v61 = vsel %vm534_vm3, %v1971_v60, 0.0 }
 0x332   : > { %620 = vrot.lane.b32.xlu0 %v2366_v16, %s2128_s12 }
 0x339   : > { %950 = vrot.lane.b32.xlu1 %v2366_v16, %s2129_s21 }
 0x351   : > { %946 = vadd.xlane.f32.xlu0 %v945_v61 }
 0x367   : > { %1115 = vrot.lane.b32.xlu0 %v2366_v16, %s2130_s23 }
 0x3a9   : > { %v617_v63 = vpop.xlane.xlu0 %616 }
 0x3aa   : > { %1972 = vrcp.f32 %v617_v63  ;;  %v1308_v63 = vrot.slane %v2363_v13, %v1307_v59 }
 0x3ad   : > { %v621_v0 = vpop.permute.xlu0 %620  ;;  %v782_v1 = vpop.xlane.xlu1 %781 }
 0x3ae   : > { %1974 = vrcp.f32 %v782_v1  ;;  %1764 = vmatpush3.msra.mxu1 %v621_v0 }
 0x3af   : > { %1773 = vmatprep.subr.mxu1 %v2119_v7 }
 0x3b4   : > { %v1973_v2 = vpop.eup %1972 }
 0x3b5   : > { %v619_v3 = vmul.f32 %v1973_v2, %v1965_v50  ;;  %v1112_v5 = vpop.xlane.xlu1 %1111  ;;  %v434_v50 = vld [vmem:[%s2328_s18] sm:$0xff] }
 0x3b6   : > { %v1852_v52 = vpack.c.bf16 %v435_v51, %v434_v50  ;;  %v438_v2 = vld [vmem:[%s2333_s17] sm:$0xff] }
 0x3b7   : > { %1766 = vmatmul.mubr.msk.f32.vlgmr.msra.gmra.mrb[4].mxu1 %vm534_vm3, %v619_v3  ;;  %v439_v3 = vld [vmem:[%s2333_s17 + $0x8] sm:$0xff] }
 0x3b8   : > { %v1975_v6 = vpop.eup %1974  ;;  %1774 = vmatpush3.msra.mxu1 %v786_v62  ;;  %1775 = vmatprep.mubr.msk.f32.mxu1 %vm2118_vm1, %v2119_v7 }
 0x3b9   : > { %v784_v8 = vmul.f32 %v1975_v6, %v1967_v53  ;;  %v951_v10 = vpop.permute.xlu1 %950  ;;  %1783 = vmatprep.subr.mxu1 %v2119_v7  ;;  %v436_v53 = vld [vmem:[%s2328_s18 + $0x10] sm:$0xff]  ;;  %s1700_s18 = sshll.u32 %s2102_s28, 7  ;;  %s2134_s28 = smov [#allocation5]  }
 0x3ba   : > { %v440_v6 = vld [vmem:[%s2333_s17 + $0x10] sm:$0xff]  ;;  %s2480_s24 = scalar_lea.hbm %s2576_s7, %s1700_s18  ;;  %s2020_s27 = sshll.u32 %s2134_s28, 4  ;;  %s2021_s27 = int_to_ptr.vmem [resolvable:$false] %s2020_s27 }
 0x3bb   : > { %1776 = vmatmul.mubr.msk.f32.vlgmr.msra.gmra.mrb[6].mxu1 %vm534_vm3, %v784_v8  ;;  %v441_v8 = vld [vmem:[%s2333_s17 + $0x18] sm:$0xff]  ;;  %s2022_s29 = scalar_lea.vmem %s2021_s27, 256  ;;  %p2023_p6 = scmp.lt.s32.totalorder %s2482_s20, %s2021_s27 }
 0x3bc   : > { %1784 = vmatpush3.msra.mxu1 %v951_v10  ;;  %1785 = vmatprep.mubr.msk.f32.mxu1 %vm2118_vm1, %v2119_v7  ;;  %v1861_v10 = vpack.c.bf16 %v441_v8, %v440_v6  ;;  %p2024_p3 = scmp.lt.s32.totalorder %s2022_s29, %s2016_s26 }
 0x3bd   : > { %1793 = vmatprep.subr.mxu1 %v2119_v7 }
 0x3be   : > { %p2025_p8 = por %p2024_p3, %p2023_p6 }
 0x3c0   : > { %p2026_p12 = pnand %p2025_p8, %p2019_p4 }
 0x3de   : > { %v947_v12 = vpop.xlane.xlu0 %946 }
 0x3df   : > { %1976 = vrcp.f32 %v947_v12  ;;  %v442_v12 = vld [vmem:[%s2333_s17 + $0x20] sm:$0xff] }
 0x3e0   : > { %1978 = vrcp.f32 %v1112_v5  ;;  %v1858_v5 = vpack.c.bf16 %v439_v3, %v438_v2 }
 0x3e2   : > { %v1116_v17 = vpop.permute.xlu0 %1115 }
 0x3e9   : > { %v1977_v14 = vpop.eup %1976 }
 0x3ea   : > { %v949_v15 = vmul.f32 %v1977_v14, %v1971_v60  ;;  %v1979_v16 = vpop.eup %1978  ;;  %v1303_v60 = vrot.slane %v2363_v13, %v1302_v58  ;;  %v443_v14 = vld [vmem:[%s2333_s17 + $0x28] sm:$0xff] }
 0x3eb   : > { %v1114_v18 = vmul.f32 %v1979_v16, %v1969_v55  ;;  %v444_v16 = vld [vmem:[%s2333_s17 + $0x30] sm:$0xff] }
 0x3ec   : > { %1786 = vmatmul.mubr.msk.f32.vlgmr.msra.gmra.mrb[8].mxu1 %vm534_vm3, %v949_v15  ;;  %v1864_v15 = vpack.c.bf16 %v443_v14, %v442_v12 }
 0x3ed   : > { %1794 = vmatpush3.msra.mxu1 %v1116_v17  ;;  %1795 = vmatprep.mubr.msk.f32.mxu1 %vm2118_vm1, %v2119_v7  ;;  %v445_v17 = vld [vmem:[%s2333_s17 + $0x38] sm:$0xff] }
 0x3ee   : > { %1851 = vmatprep.subr.bf16.mxu1 %v2117_v4 }
 0x3f0   : > { %1796 = vmatmul.mubr.msk.f32.vlgmr.msra.gmra.mrb[10].mxu1 %vm534_vm3, %v1114_v18  ;;  %v1867_v18 = vpack.c.bf16 %v445_v17, %v444_v16 }
 0x3f1   : > { %1817 = vmatprep.mubr.msk.f32.mxu1 %vm2118_vm1, %v2119_v7  ;;  %1853 = vmatpush3.bf16.msra.mxu1 %v1852_v52 }
 0x3f2   : > { %1854 = vmatprep.subr.bf16.mxu1 %v2117_v4 }
 0x48a   : > { %v692_v22 = vpop.f32.mrb[4].mxu1 }
 0x48b   : > { %v1767_v23 = vpop.f32.mrb[5].mxu1 }
 0x48e   : > { %v857_v24 = vpop.f32.mrb[6].mxu1 }
 0x48f   : > { %1192 = vrot.lane.b32.xlu1 %v857_v24, %s2131_s15  ;;  %v1777_v25 = vpop.f32.mrb[7].mxu1 }
 0x4bf   : > { %v1022_v29 = vpop.f32.mrb[8].mxu1 }
 0x4c0   : > { %1196 = vrot.lane.b32.xlu0 %v1022_v29, %s2132_s9  ;;  %v1787_v30 = vpop.f32.mrb[9].mxu1 }
 0x4c3   : > { %v1187_v31 = vpop.f32.mrb[10].mxu1 }
 0x4c4   : > { %1200 = vrot.lane.b32.xlu1 %v1187_v31, %s2133_s13  ;;  %v1797_v32 = vpop.f32.mrb[11].mxu1 }
 0x501   : > { %v1193_v33 = vpop.permute.xlu1 %1192 }
 0x502   : > { %v1203_v35 = vsel %vm534_vm3, %v692_v22, %v1193_v33 }
 0x532   : > { %v1197_v34 = vpop.permute.xlu0 %1196 }
 0x533   : > { %v1205_v36 = vsel %vm1204_vm4, %v1203_v35, %v1197_v34 }
 0x536   : > { %v1201_v37 = vpop.permute.xlu1 %1200 }
 0x537   : > { %v1207_v38 = vsel %vm1206_vm5, %v1205_v36, %v1201_v37 }
 0x538   : > { %1807 = vmatmul.mubr.msk.f32.vlgmr.msra.gmra.mrb[6].mxu0 %vm451_vm2, %v1207_v38 }
 0x539   : > { %1836 = vmatprep.mubr.msk.f32.mxu0 %vm2118_vm1, %v2119_v7  ;;  %1859 = vmatpush3.bf16.msra.mxu0 %v1858_v5 }
 0x53a   : > { %1860 = vmatprep.subr.bf16.mxu0 %v2117_v4 }
 0x53d   : > { %1862 = vmatpush3.bf16.msra.mxu0 %v1861_v10 }
 0x53e   : > { %1863 = vmatprep.subr.bf16.mxu0 %v2117_v4 }
 0x541   : > { %1865 = vmatpush3.bf16.msra.mxu0 %v1864_v15 }
 0x542   : > { %1866 = vmatprep.subr.bf16.mxu0 %v2117_v4  ;;  %v1398_v4 = vsub.s32 5, %v2359_v11 }
 0x544   : > { %v1399_v33 = vrot.slane %v2363_v13, %v1398_v4 }
 0x545   : > { %1868 = vmatpush3.bf16.msra.mxu0 %v1867_v18 }
 0x60b   : > { %v1281_v41 = vpop.f32.mrb[6].mxu0 }
 0x60c   : > { %v1282_v42 = vadd.f32 %v1281_v41, %v1211_v40  ;;  %v1808_v43 = vpop.f32.mrb[7].mxu0 }
 0x60e   : > { %v1285_v44 = vadd.f32 %v1282_v42, %v2352_v9  ;;  %v1855_v9 = vpack.c.bf16 %v437_v54, %v436_v53 }
 0x610   : > { %v1286_v45 = vsel %vm451_vm2, %v1285_v44, 0.0  ;;  %1856 = vmatpush3.bf16.msra.mxu1 %v1855_v9 }
 0x611   : > { %1287 = vadd.xlane.f32.xlu0 %v1286_v45 }
 0x69e   : > { %v1288_v46 = vpop.xlane.xlu0 %1287 }
 0x69f   : > { %v1290_v47 = vmul.f32 0.03125, %v1288_v46 }
 0x6a1   : > { %v1291_v48 = vsub.f32 %v1285_v44, %v1290_v47  ;;  %v1490_v47 = vsub.s32 6, %v2359_v11 }
 0x6a3   : > { %v1292_v49 = vmul.f32 %v1291_v48, %v1291_v48 }
 0x6a5   : > { %v1293_v7 = vsel %vm451_vm2, %v1292_v49, 0.0  ;;  %v1491_v49 = vrot.slane %v2363_v13, %v1490_v47 }
 0x6a6   : > { %1294 = vadd.xlane.f32.xlu1 %v1293_v7 }
 0x733   : > { %v1295_v55 = vpop.xlane.xlu1 %1294 }
 0x734   : > { %v1296_v56 = vmul.f32 0.03125, %v1295_v55 }
 0x736   : > { %v1297_v57 = vadd.f32 1e-12, %v1296_v56 }
 0x738   : > { %1980 = vrsqrt.f32 %v1297_v57 }
 0x742   : > { %v1981_v61 = vpop.eup %1980 }
 0x743   : > { %v1299_v62 = vmul.f32 %v1981_v61, %v1291_v48  ;;  %v1495_v48 = vsub.s32 7, %v2359_v11 }
 0x745   : > { %v1304_v0 = vmul.f32 %v1303_v60, %v1299_v62  ;;  %v1496_v51 = vrot.slane %v2363_v13, %v1495_v48 }
 0x747   : > { %v1309_v1 = vadd.f32 %v1308_v63, %v1304_v0 }
 0x749   : > { %1818 = vmatmul.mubr.msk.f32.vlgmr.msra.gmra.mrb[12].mxu1 %vm451_vm2, %v1309_v1 }
 0x81c   : > { %v1383_v21 = vpop.f32.mrb[12].mxu1 }
 0x81d   : > { %v1384_v22 = vadd.f32 %v1383_v21, %v1313_v20  ;;  %v1819_v23 = vpop.f32.mrb[13].mxu1 }
 0x81f   : > { %v1388_v24 = vmul.f32 0.044715, %v1384_v22  ;;  %v1387_v30 = vmul.f32 0.5, %v1384_v22 }
 0x821   : > { %v1389_v25 = vmul.f32 %v1388_v24, %v1384_v22 }
 0x823   : > { %v1390_v26 = vmul.f32 %v1389_v25, %v1384_v22 }
 0x825   : > { %v1391_v27 = vadd.f32 %v1390_v26, %v1384_v22 }
 0x827   : > { %v1392_v28 = vmul.f32 0.7978846, %v1391_v27 }
 0x829   : > { %1982 = vtanh.f32 %v1392_v28 }
 0x833   : > { %v1983_v29 = vpop.eup %1982 }
 0x834   : > { %v1394_v31 = vadd.f32 1.0, %v1983_v29 }
 0x836   : > { %v1395_v32 = vmul.f32 %v1394_v31, %v1387_v30 }
 0x838   : > { %1837 = vmatmul.mubr.msk.f32.vlgmr.msra.gmra.mrb[8].mxu0 %vm1400_vm6, %v1395_v32 }
 0x90b   : > { %v1470_v34 = vpop.f32.mrb[8].mxu0 }
 0x90c   : > { %v1471_v35 = vadd.f32 %v1470_v34, %v1399_v33  ;;  %v1838_v36 = vpop.f32.mrb[9].mxu0 }
 0x90e   : > { %v1474_v37 = vadd.f32 %v1471_v35, %v1309_v1 }
 0x910   : > { %v1475_v38 = vsel %vm451_vm2, %v1474_v37, 0.0 }
 0x911   : > { %1476 = vadd.xlane.f32.xlu0 %v1475_v38 }
 0x99e   : > { %v1477_v39 = vpop.xlane.xlu0 %1476 }
 0x99f   : > { %v1478_v40 = vmul.f32 0.03125, %v1477_v39 }
 0x9a1   : > { %v1479_v41 = vsub.f32 %v1474_v37, %v1478_v40 }
 0x9a3   : > { %v1480_v42 = vmul.f32 %v1479_v41, %v1479_v41 }
 0x9a5   : > { %v1481_v43 = vsel %vm451_vm2, %v1480_v42, 0.0 }
 0x9a6   : > { %1482 = vadd.xlane.f32.xlu0 %v1481_v43 }
 0xa33   : > { %v1483_v44 = vpop.xlane.xlu0 %1482 }
 0xa34   : > { %v1484_v45 = vmul.f32 0.03125, %v1483_v44 }
 0xa36   : > { %v1485_v46 = vadd.f32 1e-12, %v1484_v45 }
 0xa38   : > { %1984 = vrsqrt.f32 %v1485_v46 }
 0xa42   : > { %v1985_v7 = vpop.eup %1984 }
 0xa43   : > { %v1487_v50 = vmul.f32 %v1985_v7, %v1479_v41 }
 0xa45   : > { %v1492_v52 = vmul.f32 %v1491_v49, %v1487_v50 }
 0xa47   : > { %v1497_v53 = vadd.f32 %v1496_v51, %v1492_v52 }
 0xa49   : > { %1498 = vst.msk [vmem:[%s2340_s30] sm:$0xff] %vm451_vm2, %v1497_v53 }
 0xa4a   : > { %2029 = shalt.err (!%p2026_p12)
}
 0xa4b   : > { %s2030_s22 = scalar_lea.hbm %s2480_s24, 128  ;;  %s2034_s14 = scalar_lea.hbm %s2576_s7, 256 }
 0xa4c   : > { %p2031_p1 = scmp.ne.s32.totalorder %s2480_s24, %s2030_s22  ;;  %p2035_p10 = scmp.lt.u32.totalorder %s2480_s24, %s2576_s7 }
 0xa4d   : > { %p2036_p11 = scmp.lt.u32.totalorder %s2034_s14, %s2030_s22  ;;  %p2038_p0 = scmp.lt.u32.totalorder %s2030_s22, %s2480_s24 }
 0xa4e   : > { %p2032_p2 = pnand %p2031_p1, %p2577_p7 }
 0xa4f   : > { %p2037_p9 = por %p2036_p11, %p2035_p10 }
 0xa50   : > { %p2033_p5 = pneg %p2032_p2 }
 0xa51   : > { %p2039_p13 = por %p2038_p0, %p2037_p9 }
 0xa53   : > { %p2040_p4 = pnand %p2039_p13, %p2033_p5 }
 0xa55   : > { %2043 = shalt.err (!%p2040_p4)
}
 0xa56   : > { %1871 = dma.vmem_to_hbm [thread:$0]  (%p2577_p7), %s2482_s20, 128, %s2480_s24, %s1500_s25  }
 0xa57 PF: > { %s2578_s11 = sld [smem:[#allocation13_spill]]  ;;  %s2579_s12 = sld [smem:[#allocation8_spill]] }
 0xa58   : > { %s2580_s21 = sld [smem:[#allocation16_spill]] }
 0xa5d   : > { %p1882_p6 = scmp.ge.s32.totalorder %s2578_s11, 2  ;;  %s1525_s23 = sand.u32 1, %s2579_s12  }
 0xa5e   : > { %p2581_p3 = scmp.ne.s32.totalorder %s2580_s21, 0  ;;  %s1526_s15 = scalar_lea.sflag [#allocation4], %s1525_s23 }
 0xa60   : > { %p1878_p8 = pnand %p1882_p6, %p2581_p3 }
 0xa62   : > { %2081 = dma.done.wait (!%p1878_p8), %s1526_s15, 128  }
 0xa63   : > { %2083 = vsyncadd (!%p1878_p8), %s1526_s15, 4294967168  ;;  %s23_s8 = sadd.s32 1, %s2578_s11   ;;  %s2582_s24 = sld [smem:[#allocation9_spill]] }
 0xa64   : > { %p20_p12 = scmp.ge.s32.totalorder %s23_s8, 6   ;;  %s2583_s25 = sld [smem:[#allocation10_spill]] }
 0xa65   : > { %s2584_s26 = sld [smem:[#allocation17_spill]]  ;;  %s2585_s27 = sld [smem:[#allocation11_spill]] }
 0xa66   : > { %s2586_s28 = sld [smem:[#allocation12_spill]]  ;;  %s2587_s29 = sld [smem:[#allocation14_spill]] }
 0xa67   : > { %s2588_s30 = sld [smem:[#allocation15_spill]]  ;;  %22 = sbr.rel (!%p20_p12) target bundleno = 10 (0xa), region = 115 }
 0xa6e   :  { %1531 = vsyncpa [#allocation3], 1 }
 0xa6f   :  { %1533 = vsyncpa [#allocation3 + $0x1], 1 }
 0xa70   :  { %1534 = vsyncpa [#allocation4], 1 }
 0xa71   :  { %1536 = vsyncpa [#allocation4 + $0x1], 1 }

</bundles_post_ra>
